<compile_context>
chip_gen: v7x
topology: tpu7x:2x2x1
jax: 0.10.0
libtpu: 0.0.40
codegen_flags: <defaults>
</compile_context>

<pallas_src>
import jax
import jax.numpy as jnp
from jax.experimental import pallas as pl
from jax.experimental.pallas import tpu as pltpu


# ------------------------------- kernels ------------------------------------


def _wh_kernel(x_ref, w_ref, a_ref, wh_ref, s_ref):
    """Wh = x @ W ; [s1|s2] = Wh @ [a1|a2]  (per row block, bf16 MXU)."""
    wh = jnp.dot(x_ref[...], w_ref[...], preferred_element_type=jnp.float32)
    s_ref[...] = jnp.dot(wh.astype(jnp.bfloat16), a_ref[...],
                         preferred_element_type=jnp.float32)
    # Stored bf16: only consumed as the RHS of the p @ Wh MXU matmul.
    wh_ref[...] = wh.astype(wh_ref.dtype)


def _gat_kernel(adj_ref, wh_ref, s1_ref, s2_ref, wg_ref,
                z0_ref, xw_ref, m_sc, l_sc, acc_sc):
    """Online-softmax attention over K tiles; finalize Z_0 and xw at last K.

    Z_0 = softmax(mask(e)) @ Wh, with normalization deferred past the MXU:
    acc accumulates exp(logits - m) @ Wh; divide by l once at the end.
    """
    k = pl.program_id(1)

    @pl.when(k == 0)
    def _():
        m_sc[...] = jnp.full_like(m_sc, -jnp.inf)
        l_sc[...] = jnp.zeros_like(l_sc)
        acc_sc[...] = jnp.zeros_like(acc_sc)

    adj = adj_ref[...]                              # (tm, tk) bf16 mask/support
    e = s1_ref[...] + s2_ref[...]                   # (tm,1)+(1,tk) -> (tm,tk) f32
    e = jnp.maximum(e, 0.2 * e)                     # LeakyReLU(0.2) as one max
    logits = jnp.where(adj > 0, e, -9.0e15)         # fused mask select

    m_new = jnp.maximum(m_sc[...], jnp.max(logits, axis=1, keepdims=True))
    alpha = jnp.exp(m_sc[...] - m_new)              # rescale of old accumulators
    p = jnp.exp(logits - m_new)                     # f32 EUP exp
    l_sc[...] = alpha * l_sc[...] + jnp.sum(p, axis=1, keepdims=True)
    # Unnormalized attention straight into the MXU (bf16 operands, f32 acc).
    acc_sc[...] = alpha * acc_sc[...] + jnp.dot(
        p.astype(jnp.bfloat16), wh_ref[...], preferred_element_type=jnp.float32)
    m_sc[...] = m_new

    @pl.when(k == pl.num_programs(1) - 1)
    def _():
        inv_l = pl.reciprocal(l_sc[...], approx=True)
        z0 = acc_sc[...] * inv_l                    # deferred softmax normalize
        z0_ref[...] = z0
        # ELU; clamp the exp argument so the unselected branch cannot overflow.
        gat_out = jnp.where(z0 > 0, z0, jnp.exp(jnp.minimum(z0, 0.0)) - 1.0)
        xw = jnp.dot(gat_out.astype(jnp.bfloat16), wg_ref[...],
                     preferred_element_type=jnp.float32)
        # Stored bf16: only consumed as the RHS of the adj @ xw MXU matmul.
        xw_ref[...] = xw.astype(xw_ref.dtype)


def _gcn_kernel(adj_ref, xw_ref, f1_ref, acc_ref):
    """F_1 = relu(support @ xw), K-tiled accumulation (bf16 MXU, f32 acc)."""
    k = pl.program_id(1)

    @pl.when(k == 0)
    def _():
        acc_ref[...] = jnp.zeros_like(acc_ref)

    acc_ref[...] += jnp.dot(adj_ref[...], xw_ref[...],
                            preferred_element_type=jnp.float32)

    @pl.when(k == pl.num_programs(1) - 1)
    def _():
        f1_ref[...] = jnp.maximum(acc_ref[...], 0.0)


# ------------------------------- wrapper ------------------------------------


def _round_up(v, m):
    return -(-v // m) * m


def _tiles(n_rows):
    """(n_pad, tm, tk): row tile tm and attention-K tile tk, both dividing n_pad.

    K-tiling decouples the tiles from N, so tm stays at 128-256 rows (full MXU
    sublane utilization) and the per-step footprint is bounded regardless of
    graph size.  Small graphs collapse to a single block.
    """
    n8 = _round_up(n_rows, 8)
    if n8 <= 512:
        return n8, n8, n8                       # one block per pass
    n_pad = _round_up(n_rows, 128)
    tm = 256 if n_pad % 256 == 0 else 128
    for tk in (1024, 512, 256, 128):
        if n_pad % tk == 0:
            return n_pad, tm, tk
    return n_pad, tm, 128                        # unreachable (128 | n_pad)


def gib_forward(x, support, W, a, W_gcn):
    """GIB forward (inference, update=False, b1in=False).

    Returns (output, Z_1, Z_0). With update=False the reference keeps B_1 == I,
    so Z_1 == F_1 and `output` is literally the same tensor as Z_1.
    """
    N, d_in = x.shape
    H = W.shape[1]
    O = W_gcn.shape[1]
    H_pad = _round_up(H, 128)                    # lane-dense feature dims
    O_pad = _round_up(O, 128)

    n_pad, tm, tk = _tiles(N)
    nb, kb = n_pad // tm, n_pad // tk
    pad_n = n_pad - N

    # bf16 adjacency cast BEFORE padding (no padded f32 copy hits HBM).
    # Exact for 0/1 masks; weighted `support` incurs bf16-input-level error.
    adj_bf16 = support.astype(jnp.bfloat16)
    x_bf16 = x.astype(jnp.bfloat16)
    if pad_n:
        adj_bf16 = jnp.pad(adj_bf16, ((0, pad_n), (0, pad_n)))
        x_bf16 = jnp.pad(x_bf16, ((0, pad_n), (0, 0)))

    # Zero-pad parameter feature dims to 128 multiples (exactness preserved:
    # padded columns/rows are zero and are sliced off at the end).
    W_p = jnp.pad(W.astype(jnp.bfloat16), ((0, 0), (0, H_pad - H)))
    a1 = jnp.pad(a[:H, :], ((0, H_pad - H), (0, 0)))
    a2 = jnp.pad(a[H:, :], ((0, H_pad - H), (0, 0)))
    a_cat = jnp.concatenate([a1, a2], axis=1).astype(jnp.bfloat16)   # (H_pad, 2)
    Wg_p = jnp.pad(W_gcn.astype(jnp.bfloat16),
                   ((0, H_pad - H), (0, O_pad - O)))                 # (H_pad, O_pad)

    vmem_limit = 32 * 1024 * 1024                # safe on v5e/v6e/v7x
    cparams_1d = pltpu.CompilerParams(
        dimension_semantics=("parallel",), vmem_limit_bytes=vmem_limit)
    cparams_2d = pltpu.CompilerParams(
        dimension_semantics=("parallel", "arbitrary"), vmem_limit_bytes=vmem_limit)

    # ---- pass 1: Wh = x @ W plus fused attention projections [s1|s2] ----
    wh, s_both = pl.pallas_call(
        _wh_kernel,
        grid=(nb,),
        in_specs=[
            pl.BlockSpec((tm, d_in), lambda i: (i, 0)),
            pl.BlockSpec((d_in, H_pad), lambda i: (0, 0)),
            pl.BlockSpec((H_pad, 2), lambda i: (0, 0)),
        ],
        out_specs=(
            pl.BlockSpec((tm, H_pad), lambda i: (i, 0)),
            pl.BlockSpec((tm, 2), lambda i: (i, 0)),
        ),
        out_shape=(
            jax.ShapeDtypeStruct((n_pad, H_pad), jnp.bfloat16),
            jax.ShapeDtypeStruct((n_pad, 2), jnp.float32),
        ),
        compiler_params=cparams_1d,
    )(x_bf16, W_p, a_cat)

    s1 = s_both[:, 0:1]                          # (n_pad, 1)
    s2_row = s_both[:, 1].reshape(1, n_pad)      # (1, n_pad), lane-major

    # ---- pass 2: K-tiled online-softmax attention, Z_0 and xw = ELU(Z_0)@W_gcn
    z0_p, xw = pl.pallas_call(
        _gat_kernel,
        grid=(nb, kb),
        in_specs=[
            pl.BlockSpec((tm, tk), lambda i, k: (i, k)),        # adj tile
            pl.BlockSpec((tk, H_pad), lambda i, k: (k, 0)),     # Wh K-stream
            pl.BlockSpec((tm, 1), lambda i, k: (i, 0)),         # s1 row block
            pl.BlockSpec((1, tk), lambda i, k: (0, k)),         # s2^T K-block
            pl.BlockSpec((H_pad, O_pad), lambda i, k: (0, 0)),  # W_gcn
        ],
        out_specs=(
            pl.BlockSpec((tm, H_pad), lambda i, k: (i, 0)),
            pl.BlockSpec((tm, O_pad), lambda i, k: (i, 0)),
        ),
        out_shape=(
            jax.ShapeDtypeStruct((n_pad, H_pad), jnp.float32),   # Z_0
            jax.ShapeDtypeStruct((n_pad, O_pad), jnp.bfloat16),  # ELU(Z_0)@W_gcn
        ),
        scratch_shapes=[
            pltpu.VMEM((tm, 1), jnp.float32),        # running max m
            pltpu.VMEM((tm, 1), jnp.float32),        # running denom l
            pltpu.VMEM((tm, H_pad), jnp.float32),    # unnormalized acc
        ],
        compiler_params=cparams_2d,
    )(adj_bf16, wh, s1, s2_row, Wg_p)

    # ---- pass 3: F_1 = relu(support @ xw), K-tiled; Z_1 = I @ F_1 elided ----
    f1_p = pl.pallas_call(
        _gcn_kernel,
        grid=(nb, kb),
        in_specs=[
            pl.BlockSpec((tm, tk), lambda i, k: (i, k)),
            pl.BlockSpec((tk, O_pad), lambda i, k: (k, 0)),
        ],
        out_specs=pl.BlockSpec((tm, O_pad), lambda i, k: (i, 0)),
        out_shape=jax.ShapeDtypeStruct((n_pad, O_pad), jnp.float32),
        scratch_shapes=[pltpu.VMEM((tm, O_pad), jnp.float32)],
        compiler_params=cparams_2d,
    )(adj_bf16, xw)

    z0 = z0_p[:N, :H]
    z1 = f1_p[:N, :O]
    # `output = Z_1` in the reference: return the same array twice (no 2nd write).
    return z1, z1, z0


# --------------------------------- demo --------------------------------------


def _xavier_uniform(key, shape, gain):
    fan_in, fan_out = shape
    bound = gain * (6.0 / (fan_in + fan_out)) ** 0.5
    return jax.random.uniform(key, shape, jnp.float32, -bound, bound)


if __name__ == "__main__":
    # Small shapes: N nodes=8, input_dim=16, hidden=32, output_dim=4.
    N, D_IN, HID, D_OUT = 8, 16, 32, 4

    key = jax.random.PRNGKey(0)
    k_x, k_adj, k_W, k_a, k_gcn = jax.random.split(key, 5)

    x = jax.random.normal(k_x, (N, D_IN), jnp.float32)

    # Dense adjacency / support matrix with self-loops (GAT mask + GCN support).
    adj = (jax.random.uniform(k_adj, (N, N)) > 0.5).astype(jnp.float32)
    adj = jnp.maximum(adj, jnp.eye(N, dtype=jnp.float32))

    # Deterministic parameter init mirroring the module's __init__:
    W = _xavier_uniform(k_W, (D_IN, HID), 1.414)      # GAT W
    a = _xavier_uniform(k_a, (2 * HID, 1), 1.414)     # GAT a
    W_gcn = jax.random.normal(k_gcn, (HID, D_OUT), jnp.float32)  # torch.randn

    output, Z1, Z0 = gib_forward(x, adj, W, a, W_gcn)
    jax.block_until_ready((output, Z1, Z0))

    assert output.shape == (N, D_OUT) and Z1.shape == (N, D_OUT) and Z0.shape == (N, HID)
    assert bool(jnp.all(jnp.isfinite(output))) and bool(jnp.all(jnp.isfinite(Z0)))
    print("KERNEL_OK")
</pallas_src>

<mosaic_0001>
module attributes {stable_mosaic.version = 11 : i64} {
  func.func @_wh_kernel(%arg0: i32, %arg1: memref<8x16xbf16, #tpu.memory_space<vmem>>, %arg2: memref<16x128xbf16, #tpu.memory_space<vmem>>, %arg3: memref<128x2xbf16, #tpu.memory_space<vmem>>, %arg4: memref<8x128xbf16, #tpu.memory_space<vmem>>, %arg5: memref<8x2xf32, #tpu.memory_space<vmem>>) attributes {dimension_semantics = [#tpu.dimension_semantics<parallel>], iteration_bounds = array<i64: 1>, scalar_prefetch = 0 : i64, scratch_operands = 0 : i64, tpu.core_type = #tpu.core_type<tc>, window_params = [{transform_indices = @transform_0, window_bounds = array<i64: 8, 16>}, {pipeline_mode = #tpu.pipeline_mode<synchronous>, transform_indices = @transform_1, window_bounds = array<i64: 16, 128>}, {pipeline_mode = #tpu.pipeline_mode<synchronous>, transform_indices = @transform_2, window_bounds = array<i64: 128, 2>}, {transform_indices = @transform_3, window_bounds = array<i64: 8, 128>}, {transform_indices = @transform_4, window_bounds = array<i64: 8, 2>}]} {
    %c0 = arith.constant 0 : index
    %c0_0 = arith.constant 0 : index
    %0 = vector.load %arg1[%c0, %c0_0] : memref<8x16xbf16, #tpu.memory_space<vmem>>, vector<8x16xbf16>
    %c0_1 = arith.constant 0 : index
    %c0_2 = arith.constant 0 : index
    %1 = vector.load %arg2[%c0_1, %c0_2] : memref<16x128xbf16, #tpu.memory_space<vmem>>, vector<16x128xbf16>
    %cst = arith.constant dense<0.000000e+00> : vector<8x128xf32>
    %2 = tpu.matmul %0, %1, %cst {dimension_numbers = #tpu.dot_dimension_numbers<[1], [0], [0], [1], [0, 0, 1, 1], [], []>} : vector<8x16xbf16>, vector<16x128xbf16>, vector<8x128xf32> -> vector<8x128xf32>
    %3 = arith.truncf %2 : vector<8x128xf32> to vector<8x128xbf16>
    %c0_3 = arith.constant 0 : index
    %c0_4 = arith.constant 0 : index
    %4 = vector.load %arg3[%c0_3, %c0_4] : memref<128x2xbf16, #tpu.memory_space<vmem>>, vector<128x2xbf16>
    %cst_5 = arith.constant dense<0.000000e+00> : vector<8x2xf32>
    %5 = tpu.matmul %3, %4, %cst_5 {dimension_numbers = #tpu.dot_dimension_numbers<[1], [0], [0], [1], [0, 0, 1, 1], [], []>} : vector<8x128xbf16>, vector<128x2xbf16>, vector<8x2xf32> -> vector<8x2xf32>
    %c0_6 = arith.constant 0 : index
    %c0_7 = arith.constant 0 : index
    %6 = vector.load %arg5[%c0_6, %c0_7] : memref<8x2xf32, #tpu.memory_space<vmem>>, vector<8x2xf32>
    tpu.vector_store %arg5[%c0_6, %c0_7], %5 {strides = array<i32>} : memref<8x2xf32, #tpu.memory_space<vmem>>, vector<8x2xf32>,
    %7 = arith.truncf %2 : vector<8x128xf32> to vector<8x128xbf16>
    %c0_8 = arith.constant 0 : index
    %c0_9 = arith.constant 0 : index
    %8 = vector.load %arg4[%c0_8, %c0_9] : memref<8x128xbf16, #tpu.memory_space<vmem>>, vector<8x128xbf16>
    tpu.vector_store %arg4[%c0_8, %c0_9], %7 {strides = array<i32>} : memref<8x128xbf16, #tpu.memory_space<vmem>>, vector<8x128xbf16>,
    return
  }
  func.func @transform_0(%arg0: i32) -> (i32, i32) {
    %c0_i32 = arith.constant 0 : i32
    %c0_i32_0 = arith.constant 0 : i32
    return %arg0, %c0_i32 : i32, i32
  }
  func.func @transform_1(%arg0: i32) -> (i32, i32) {
    %c0_i32 = arith.constant 0 : i32
    %c0_i32_0 = arith.constant 0 : i32
    %c0_i32_1 = arith.constant 0 : i32
    return %c0_i32, %c0_i32_0 : i32, i32
  }
  func.func @transform_2(%arg0: i32) -> (i32, i32) {
    %c0_i32 = arith.constant 0 : i32
    %c0_i32_0 = arith.constant 0 : i32
    %c0_i32_1 = arith.constant 0 : i32
    return %c0_i32, %c0_i32_0 : i32, i32
  }
  func.func @transform_3(%arg0: i32) -> (i32, i32) {
    %c0_i32 = arith.constant 0 : i32
    %c0_i32_0 = arith.constant 0 : i32
    return %arg0, %c0_i32 : i32, i32
  }
  func.func @transform_4(%arg0: i32) -> (i32, i32) {
    %c0_i32 = arith.constant 0 : i32
    %c0_i32_0 = arith.constant 0 : i32
    return %arg0, %c0_i32 : i32, i32
  }
}

</mosaic_0001>

<bundles_post_ra>
// kernel: tpu_custom_call.1
= control target key start
LH: loop header
LB: loop body
LE: loop exit
PB: predicated region body
PF: predicated region fallthrough
CT: control target
= control target key end

     0   :  { %v280_v1 = vmov 0.0   ;;  %vm281_vm0 = vmmov 0   ;;  %vm27_vm1 = vcmask 130048   ;;  %s353_s0 = inlined_call_operand.vmem [shape: bf16[8,16], index: 0, kind: input, shape index: {}]   ;;  %s354_s1 = inlined_call_operand.vmem [shape: bf16[16,128], index: 1, kind: input, shape index: {}]   ;;  %s355_s2 = inlined_call_operand.vmem [shape: bf16[128,2], index: 2, kind: input, shape index: {}]   ;;  %s356_s3 = inlined_call_operand.hbm [shape: bf16[8,128], index: 3, kind: output, shape index: {0}]   ;;  %s357_s4 = inlined_call_operand.vmem [shape: f32[8,2], index: 4, kind: output, shape index: {1}]  }
   0x1   :  { %v247_v0 = vld [vmem:[%s354_s1] sm:$0xff]   ;;  %218 = vmatprep.subr.bf16.mxu0 %v280_v1  ;;  %224 = vmatprep.subr.bf16.mxu1 %v280_v1  ;;  %v249_v4 = vld [vmem:[%s355_s2 + $0x8] sm:$0xff]   ;;  %v250_v5 = vld [vmem:[%s355_s2 + $0x10] sm:$0xff]  }
   0x2   :  { %v18_v2 = vld [vmem:[%s353_s0] sm:$0xf]  ;;  %219 = vmatpush3.bf16.msra.mxu0 %v247_v0  ;;  %220 = vmatprep.mubr.msk.bf16.mxu0 %vm281_vm0, %v280_v1 }
   0x3   :  { %v248_v3 = vld [vmem:[%s355_s2] sm:$0xff]   ;;  %240 = vmatprep.mubr.msk.bf16.mxu1 %vm281_vm0, %v280_v1 }
   0x4   :  { %225 = vmatpush3.bf16.msra.mxu1 %v248_v3 }
   0x5   :  { %221 = vmatmul.mubr.msk.bf16.vlgmr.msra.gmra.mrb[0].mxu0 %vm27_vm1, %v18_v2  ;;  %226 = vmatprep.subr.bf16.mxu1 %v280_v1 }
   0x8   :  { %227 = vmatpush3.bf16.msra.mxu1 %v249_v4 }
   0x9   :  { %228 = vmatprep.subr.bf16.mxu1 %v280_v1 }
   0xa   :  { %10 = vsyncpa [#allocation3], 0  ;;  %v251_v6 = vld [vmem:[%s355_s2 + $0x18] sm:$0xff]   ;;  %v252_v7 = vld [vmem:[%s355_s2 + $0x20] sm:$0xff]   ;;  %s282_s7 = smov [#allocation2]  }
   0xb   :  { %v253_v8 = vld [vmem:[%s355_s2 + $0x28] sm:$0xff]   ;;  %v254_v9 = vld [vmem:[%s355_s2 + $0x30] sm:$0xff]   ;;  %v255_v10 = vld [vmem:[%s355_s2 + $0x38] sm:$0xff]   ;;  %s185_s8 = sshll.u32 %s282_s7, 4  ;;  %s186_s8 = int_to_ptr.vmem [resolvable:$true] %s185_s8 }
   0xc   :  { %229 = vmatpush3.bf16.msra.mxu1 %v250_v5  ;;  %s256_s9 = scalar_lea.vmem %s186_s8, 64  ;;  %p261_p1 = scmp.lt.s32.totalorder %s186_s8, %s186_s8 }
   0xd   :  { %230 = vmatprep.subr.bf16.mxu1 %v280_v1  ;;  %p257_p0 = scmp.ne.s32.totalorder %s186_s8, %s256_s9  ;;  %p262_p2 = scmp.lt.s32.totalorder %s256_s9, %s256_s9 }
   0xf   :  { %p263_p3 = por %p262_p2, %p261_p1 }
  0x10   :  { %231 = vmatpush3.bf16.msra.mxu1 %v251_v6 }
  0x11   :  { %232 = vmatprep.subr.bf16.mxu1 %v280_v1  ;;  %p264_p4 = pnand %p263_p3, %p257_p0 }
  0x14   :  { %233 = vmatpush3.bf16.msra.mxu1 %v252_v7 }
  0x15   :  { %234 = vmatprep.subr.bf16.mxu1 %v280_v1 }
  0x18   :  { %235 = vmatpush3.bf16.msra.mxu1 %v253_v8 }
  0x19   :  { %236 = vmatprep.subr.bf16.mxu1 %v280_v1 }
  0x1c   :  { %237 = vmatpush3.bf16.msra.mxu1 %v254_v9 }
  0x1d   :  { %238 = vmatprep.subr.bf16.mxu1 %v280_v1 }
  0x20   :  { %239 = vmatpush3.bf16.msra.mxu1 %v255_v10 }
  0xd8   :  { %v65_v11 = vpop.f32.mrb[0].mxu0 }
  0xd9   :  { %v71_v12 = vpack.c.bf16 %v65_v11, %v65_v11  ;;  %v222_v13 = vpop.f32.mrb[1].mxu0 }
  0xda   :  { %v68_v14 = vpop.f32.mrb[2].mxu0 }
  0xdb   :  { %178 = vst [vmem:[#allocation2] sm:$0xf] %v71_v12  ;;  %v223_v15 = vpop.f32.mrb[3].mxu0  ;;  %241 = vmatmul.mubr.bf16.vlgmr.msra.gmra.mrb[0].mxu1 %v71_v12 }
  0xdc   :  { %267 = shalt.err (!%p264_p4)
}
  0xdd   :  { %s268_s11 = scalar_lea.hbm %s356_s3, 64 }
  0xde   :  { %p269_p5 = scmp.ne.s32.totalorder %s356_s3, %s268_s11  ;;  %p272_p6 = scmp.lt.u32.totalorder %s268_s11, %s356_s3 }
  0xe0   :  { %p274_p7 = pnand %p272_p6, %p269_p5 }
  0xe2   :  { %277 = shalt.err (!%p274_p7)
}
  0xe3   :  { %188 = dma.vmem_to_hbm [thread:$0]  %s186_s8, 64, %s356_s3, [#allocation3]   ;;  %vm176_vm2 = vcmask 15360  }
 0x1ae   :  { %v170_v16 = vpop.f32.mrb[0].mxu1 }
 0x1af   :  { %177 = vst.msk [vmem:[%s357_s4] sm:$0xff] %vm176_vm2, %v170_v16  ;;  %v242_v17 = vpop.f32.mrb[1].mxu1 }
 0x1b0   :  { %v173_v18 = vpop.f32.mrb[2].mxu1 }
 0x1b1   :  { %v243_v19 = vpop.f32.mrb[3].mxu1 }
 0x1b2   :  { %278 = dma.done.wait [#allocation3], 64  }
 0x1b3   :  { %279 = vsyncadd [#allocation3], 4294967232 }
 0x1b4   :  { %196 = vsyncpa [#allocation3], 1 }

</bundles_post_ra>
